<compile_context>
chip_gen: v5e
topology: v5e:2x2
jax: 0.10.0
libtpu: 0.0.40
codegen_flags: <defaults>
</compile_context>

<pallas_src>
import jax
import jax.numpy as jnp
from jax.experimental import pallas as pl
from jax.experimental.pallas import tpu as pltpu


def _make_kernel(kh, kw, n_conv, win, length):
    """Builds the fused conv kernel for static (kh, kw, N, Win, L)."""

    def kernel(x_ref, w_ref, b_ref, o_ref):
        # x_ref: (1, Cin, L)  w_ref: (kh*kw*N, Cin)  b_ref: (N, 1)  o_ref: (1, N, L)
        x = x_ref[0]                                                    # (Cin, L)
        # Single MXU matmul: for every conv tap (i, j) and output channel n,
        #   z[(i*kw + j)*N + n, p] = sum_c weight[n, c, i, j] * x[c, p]
        z = jnp.dot(w_ref[...], x, preferred_element_type=jnp.float32)  # (kh*kw*N, L)

        acc = None
        for i in range(kh):
            for j in range(kw):
                k = i * kw + j
                off = i * win + j          # shift in the flattened (h*Win + w) index
                zb = z[k * n_conv:(k + 1) * n_conv, :]                  # (N, L)
                if off:
                    # Want zb_shift[p] = zb[p + off]; pltpu.roll follows np.roll
                    # semantics, so use the equivalent non-negative shift L - off.
                    # Wrapped lanes only reach columns that are discarded later.
                    zb = pltpu.roll(zb, shift=length - off, axis=1)
                acc = zb if acc is None else acc + zb

        o_ref[0] = (acc + b_ref[...]).astype(o_ref.dtype)

    return kernel


def sp_conv_transpose2d(x, weight, bias, r):
    """x: (B, Cin, Hin, Win); weight: (Cout*r, Cin, kh, kw); bias: (Cout*r,)."""
    B, Cin, Hin, Win = x.shape
    N, Cin_w, kh, kw = weight.shape
    assert Cin == Cin_w and N % r == 0
    Cout = N // r
    Hout = Hin - kh + 1
    Wout = Win - kw + 1
    L = Hin * Win

    # ---- layout glue (no real data movement) ----
    # Flatten spatial dims onto the lane axis; regroup weights so conv tap (i, j)
    # owns a contiguous block of N rows: W_stack[(i*kw + j)*N + n, c] = W[n,c,i,j].
    x_flat = x.reshape(B, Cin, L)
    w_stack = jnp.transpose(weight, (2, 3, 0, 1)).reshape(kh * kw * N, Cin)
    b_col = bias.reshape(N, 1).astype(jnp.float32)

    conv_flat = pl.pallas_call(
        _make_kernel(kh, kw, N, Win, L),
        out_shape=jax.ShapeDtypeStruct((B, N, L), x.dtype),
        grid_spec=pltpu.PrefetchScalarGridSpec(
            num_scalar_prefetch=0,
            grid=(B,),
            in_specs=[
                pl.BlockSpec((1, Cin, L), lambda b: (b, 0, 0)),
                pl.BlockSpec((kh * kw * N, Cin), lambda b: (0, 0)),
                pl.BlockSpec((N, 1), lambda b: (0, 0)),
            ],
            out_specs=pl.BlockSpec((1, N, L), lambda b: (b, 0, 0)),
        ),
        compiler_params=pltpu.CompilerParams(
            dimension_semantics=("parallel",)),
    )(x_flat, w_stack, b_col)

    # ---- drop invalid (partial-window) columns + sub-pixel width shuffle ----
    # conv channel index n = j*Cout + c  ->  y[b, c, h, w*r + j]
    conv = conv_flat.reshape(B, N, Hin, Win)[:, :, :Hout, :Wout]
    out = conv.reshape(B, r, Cout, Hout, Wout)
    out = out.transpose(0, 2, 3, 4, 1)                   # (B, Cout, Hout, Wout, r)
    return out.reshape(B, Cout, Hout, Wout * r)


def _reference(x, weight, bias, r):
    conv = jax.lax.conv_general_dilated(
        x, weight, window_strides=(1, 1), padding="VALID",
        dimension_numbers=("NCHW", "OIHW", "NCHW"))
    conv = conv + bias[None, :, None, None]
    B, N, H, W = conv.shape
    Cout = N // r
    out = conv.reshape(B, r, Cout, H, W).transpose(0, 2, 3, 4, 1)
    return out.reshape(B, Cout, H, W * r)


if __name__ == "__main__":
    # Module hyperparameters (DPTNet-style sub-pixel conv): kernel (1,3), r=2.
    in_channels, out_channels, r = 4, 4, 2
    kh, kw = 1, 3
    B, Hin, Win = 2, 16, 16

    key = jax.random.PRNGKey(0)
    kx, kw_key, kb_key = jax.random.split(key, 3)

    x = jax.random.normal(kx, (B, in_channels, Hin, Win), dtype=jnp.float32)

    # Deterministic Conv2d-style init (uniform +/- 1/sqrt(fan_in)).
    fan_in = in_channels * kh * kw
    bound = 1.0 / (fan_in ** 0.5)
    weight = jax.random.uniform(
        kw_key, (out_channels * r, in_channels, kh, kw),
        minval=-bound, maxval=bound, dtype=jnp.float32)
    bias = jax.random.uniform(
        kb_key, (out_channels * r,), minval=-bound, maxval=bound,
        dtype=jnp.float32)

    y = sp_conv_transpose2d(x, weight, bias, r)
    y = jax.block_until_ready(y)

    y_ref = _reference(x, weight, bias, r)
    assert y.shape == (B, out_channels, Hin - kh + 1, (Win - kw + 1) * r)
    assert jnp.allclose(y, y_ref, atol=1e-5, rtol=1e-5)

    print("KERNEL_OK")
</pallas_src>

<mosaic_0001>
module attributes {stable_mosaic.version = 11 : i64} {
  func.func @kernel(%arg0: i32, %arg1: memref<1x4x256xf32, #tpu.memory_space<vmem>>, %arg2: memref<24x4xf32, #tpu.memory_space<vmem>>, %arg3: memref<8x1xf32, #tpu.memory_space<vmem>>, %arg4: memref<1x8x256xf32, #tpu.memory_space<vmem>>) attributes {dimension_semantics = [#tpu.dimension_semantics<parallel>], iteration_bounds = array<i64: 2>, scalar_prefetch = 0 : i64, scratch_operands = 0 : i64, tpu.core_type = #tpu.core_type<tc>, window_params = [{transform_indices = @transform_0, window_bounds = array<i64: 1, 4, 256>}, {pipeline_mode = #tpu.pipeline_mode<synchronous>, transform_indices = @transform_1, window_bounds = array<i64: 24, 4>}, {pipeline_mode = #tpu.pipeline_mode<synchronous>, transform_indices = @transform_2, window_bounds = array<i64: 8, 1>}, {transform_indices = @transform_3, window_bounds = array<i64: 1, 8, 256>}]} {
    %c0 = arith.constant 0 : index
    %c0_0 = arith.constant 0 : index
    %c0_1 = arith.constant 0 : index
    %0 = vector.load %arg1[%c0, %c0_0, %c0_1] : memref<1x4x256xf32, #tpu.memory_space<vmem>>, vector<1x4x256xf32>
    %1 = vector.shape_cast %0 : vector<1x4x256xf32> to vector<4x256xf32>
    %c0_2 = arith.constant 0 : index
    %c0_3 = arith.constant 0 : index
    %2 = vector.load %arg2[%c0_2, %c0_3] : memref<24x4xf32, #tpu.memory_space<vmem>>, vector<24x4xf32>
    %cst = arith.constant dense<0.000000e+00> : vector<24x256xf32>
    %3 = tpu.matmul %2, %1, %cst {dimension_numbers = #tpu.dot_dimension_numbers<[1], [0], [0], [1], [0, 0, 1, 1], [], []>} : vector<24x4xf32>, vector<4x256xf32>, vector<24x256xf32> -> vector<24x256xf32>
    %4 = vector.extract_strided_slice %3 {offsets = [0, 0], sizes = [8, 256], strides = [1, 1]} : vector<24x256xf32> to vector<8x256xf32>
    %5 = vector.extract_strided_slice %3 {offsets = [8, 0], sizes = [8, 256], strides = [1, 1]} : vector<24x256xf32> to vector<8x256xf32>
    %c255_i32 = arith.constant 255 : i32
    %6 = tpu.dynamic_rotate %5 by %c255_i32 dim 1 : vector<8x256xf32>, i32 -> vector<8x256xf32>
    %7 = arith.addf %4, %6 : vector<8x256xf32>
    %8 = vector.extract_strided_slice %3 {offsets = [16, 0], sizes = [8, 256], strides = [1, 1]} : vector<24x256xf32> to vector<8x256xf32>
    %c254_i32 = arith.constant 254 : i32
    %9 = tpu.dynamic_rotate %8 by %c254_i32 dim 1 : vector<8x256xf32>, i32 -> vector<8x256xf32>
    %10 = arith.addf %7, %9 : vector<8x256xf32>
    %c0_4 = arith.constant 0 : index
    %c0_5 = arith.constant 0 : index
    %11 = vector.load %arg3[%c0_4, %c0_5] : memref<8x1xf32, #tpu.memory_space<vmem>>, vector<8x1xf32>
    %12 = vector.broadcast %11 : vector<8x1xf32> to vector<8x256xf32>
    %13 = arith.addf %10, %12 : vector<8x256xf32>
    %c0_6 = arith.constant 0 : index
    %c0_7 = arith.constant 0 : index
    %c0_8 = arith.constant 0 : index
    %14 = vector.load %arg4[%c0_6, %c0_7, %c0_8] : memref<1x8x256xf32, #tpu.memory_space<vmem>>, vector<1x8x256xf32>
    %15 = vector.shape_cast %14 : vector<1x8x256xf32> to vector<8x256xf32>
    %16 = vector.shape_cast %13 : vector<8x256xf32> to vector<1x8x256xf32>
    tpu.vector_store %arg4[%c0_6, %c0_7, %c0_8], %16 {strides = array<i32>} : memref<1x8x256xf32, #tpu.memory_space<vmem>>, vector<1x8x256xf32>,
    return
  }
  func.func @transform_0(%arg0: i32) -> (i32, i32, i32) {
    %c0_i32 = arith.constant 0 : i32
    %c0_i32_0 = arith.constant 0 : i32
    %c0_i32_1 = arith.constant 0 : i32
    return %arg0, %c0_i32, %c0_i32_0 : i32, i32, i32
  }
  func.func @transform_1(%arg0: i32) -> (i32, i32) {
    %c0_i32 = arith.constant 0 : i32
    %c0_i32_0 = arith.constant 0 : i32
    %c0_i32_1 = arith.constant 0 : i32
    return %c0_i32, %c0_i32_0 : i32, i32
  }
  func.func @transform_2(%arg0: i32) -> (i32, i32) {
    %c0_i32 = arith.constant 0 : i32
    %c0_i32_0 = arith.constant 0 : i32
    %c0_i32_1 = arith.constant 0 : i32
    return %c0_i32, %c0_i32_0 : i32, i32
  }
  func.func @transform_3(%arg0: i32) -> (i32, i32, i32) {
    %c0_i32 = arith.constant 0 : i32
    %c0_i32_0 = arith.constant 0 : i32
    %c0_i32_1 = arith.constant 0 : i32
    return %arg0, %c0_i32, %c0_i32_0 : i32, i32, i32
  }
}

</mosaic_0001>

<bundles_post_ra>
// kernel: tpu_custom_call.1
= control target key start
LH: loop header
LB: loop body
LE: loop exit
PB: predicated region body
PF: predicated region fallthrough
CT: control target
= control target key end

     0   :  { %8 = vsyncpa [#allocation3], 0  ;;  %s602_s0 = inlined_call_operand.vmem [shape: f32[2,4,256], index: 0, kind: input, shape index: {}]   ;;  %s603_s1 = inlined_call_operand.vmem [shape: f32[24,4], index: 1, kind: input, shape index: {}]   ;;  %s604_s2 = inlined_call_operand.vmem [shape: f32[8,1], index: 2, kind: input, shape index: {}]   ;;  %s605_s3 = inlined_call_operand.hbm [shape: f32[2,8,256], index: 3, kind: output, shape index: {}]  }
   0x1   :  { %10 = vsyncpa [#allocation3 + $0x1], 0  ;;  %s505_s12 = smov 0   ;;  %s507_s13 = smov 0  }
   0x2   :  { %s509_s14 = smov 0   ;;  %s511_s15 = smov 0  }
   0x3 LB: > { %s526_s16 = sadd.s32 4294967295, %s480_s15   ;;  %s350_s17 = sadd.s32 4294967294, %s480_s15   ;;  %s480_s15 = sphi %s511_s15, %s611_s15   ;;  %s476_s14 = sphi %s509_s14, %s610_s14   ;;  %s472_s13 = sphi %s507_s13, %s609_s13   ;;  %s468_s12 = sphi %s505_s12, %s608_s12  }
   0x4   : > { %s530_s18 = sadd.s32 1, %s480_s15   ;;  %s91_s19 = sadd.s32 1, %s476_s14 }
   0x5   : > { %s88_s20 = ssub.s32 %s480_s15, %s530_s18  ;;  %p101_p0 = scmp.ne.s32.totalorder %s476_s14, %s472_s13 }
   0x6   : > { %p89_p1 = scmp.eq.s32.totalorder %s88_s20, 0  ;;  %p102_p2 = scmp.eq.s32.totalorder %s526_s16, 1 }
   0x7   : > { %p107_p3 = scmp.ne.s32.totalorder %s472_s13, %s468_s12  ;;  %p108_p4 = scmp.eq.s32.totalorder %s350_s17, 1 }
   0x8   : > { %s541_s21 = scalar_select %p89_p1, %s476_s14, %s91_s19  }
   0x9   : > { %p543_p5 = por %p102_p2, %p101_p0  ;;  %p547_p6 = por %p108_p4, %p107_p3 }
   0xa   : > { %p353_p7 = scmp.ge.s32.totalorder %s480_s15, 1  ;;  %p140_p8 = scmp.lt.s32.totalorder %s480_s15, 3 }
   0xc   : > { %p141_p9 = pnand %p353_p7, %p140_p8 }
   0xd   : > { %p164_p10 = scmp.lt.s32.totalorder (!%p141_p9), %s526_s16, 1  ;;  %s483_s10 = smov (!%p141_p9), 127  }
   0xe   : > { %144 = sbr.rel (%p141_p9) target bundleno = 305 (0x131), region = 32  ;;  %s484_s11 = smov (!%p141_p9), 126  }
   0xf   : > { %s161_s17 = sand.u32 (!%p141_p9), 1, %s472_s13   ;;  %s371_s20 = sshll.u32 (!%p141_p9), %s526_s16, 4 }
  0x10   : > { %s354_s19 = sshll.u32 (!%p141_p9), %s161_s17, 4  ;;  %s286_s26 = scalar_lea.hbm (!%p141_p9), %s605_s3, %s371_s20 }
  0x11   : > { %s163_s27 = scalar_lea.vmem (!%p141_p9), [#allocation2], %s354_s19  ;;  %s275_s29 = scalar_lea.sflag (!%p141_p9), [#allocation3], %s161_s17 }
  0x12   : > { %s438_s7 = scalar_lea.hbm (!%p141_p9), %s605_s3, 32 }
  0x13   : > { %s165_s24 = scalar_select %p164_p10, %s526_s16, 1  ;;  %vm187_vm0 = vcmask 1043456   ;;  %v171_v1 = vld [vmem:[%s603_s1 + $0x8] sm:$0xff]  ;;  %vm177_vm1 = vcmask 31744   ;;  %v170_v4 = vld [vmem:[%s603_s1] sm:$0xff]  ;;  %v172_v5 = vld [vmem:[%s603_s1 + $0x10] sm:$0xff]  ;;  %v248_v13 = vlaneseq }
  0x14   : > { %v264_v6 = vld [vmem:[%s604_s2] sm:$0xff]  ;;  %v482_v7 = vmov 0   ;;  %s288_s16 = sshll.u32 %s163_s27, 4  ;;  %s289_s16 = int_to_ptr.vmem [resolvable:$true] %s288_s16 }
  0x15   : > { %s370_s25 = sshll.u32 %s165_s24, 3  ;;  %416 = vset.pattern.permute.xlu2 %v482_v7  ;;  %417 = vset.pattern.permute.xlu0 %v482_v7  ;;  %v249_v14 = vand.u32 127, %v248_v13 }
  0x16   : > { %s168_s28 = scalar_lea.vmem %s602_s0, %s370_s25  ;;  %267 = vperm.xlu2 %416, %v264_v6  }
  0x17   : > { %v169_v0 = vld [vmem:[%s168_s28] sm:$0xff]  ;;  %vm250_vm2 = vcmp.lt.s32.totalorder %v249_v14, 127  ;;  %vm259_vm3 = vcmp.lt.s32.totalorder %v249_v14, 126  ;;  %s290_s28 = sshll.u32 %s286_s26, 4  ;;  %s291_s28 = int_to_ptr.hbm [resolvable:$true] %s290_s28 }
  0x18   : > { %174 = vst [vmem:[#allocation1] ss:$2 sm:$0xff] %v169_v0  ;;  %s432_s30 = sshra.s32 %s291_s28, 4  ;;  %s433_s30 = int_to_ptr.hbm [resolvable:$true] %s432_s30 }
  0x19   : > { %s434_s4 = scalar_lea.hbm %s433_s30, 16  ;;  %p439_p0 = scmp.lt.s32.totalorder %s433_s30, %s605_s3 }
  0x1a   : > { %p435_p11 = scmp.ne.s32.totalorder %s433_s30, %s434_s4  ;;  %p440_p1 = scmp.lt.s32.totalorder %s438_s7, %s434_s4 }
  0x1c   : > { %p436_p12 = pnand %p435_p11, %p543_p5  ;;  %p441_p2 = por %p440_p1, %p439_p0 }
  0x1e   : > { %p437_p13 = pneg %p436_p12 }
  0x1f   : > { %v175_v2 = vld.sshfl [vmem:[#allocation1] sm:$0xff pattern:$0x75316420]  ;;  %v176_v3 = vld.sshfl [vmem:[#allocation1 + $0x8] sm:$0xff pattern:$0x75316420] }
  0x20   : > { %372 = vmatpush.msk.msra.mxu2 %vm187_vm0, %v175_v2  ;;  %373 = vmatpush.msk.msra.mxu3 %vm187_vm0, %v176_v3  ;;  %p442_p3 = pnand %p441_p2, %p437_p13 }
  0x21   : > { %359 = vmatmul.msk.f32.vlgmr.msra.gmra.mxu2 %vm177_vm1, %v171_v1  ;;  %363 = vmatmul.msk.f32.vlgmr.msra.gmra.mxu3 %vm177_vm1, %v171_v1 }
  0x22   : > { %357 = vmatpush.msk.msra.mxu0 %vm187_vm0, %v175_v2  ;;  %361 = vmatpush.msk.msra.mxu1 %vm187_vm0, %v176_v3 }
  0x23   : > { %358 = vmatmul.msk.f32.vlgmr.msra.gmra.mxu0 %vm177_vm1, %v170_v4  ;;  %362 = vmatmul.msk.f32.vlgmr.msra.gmra.mxu1 %vm177_vm1, %v170_v4 }
  0x29   : > { %360 = vmatmul.msk.f32.gmra.mxu2 %vm177_vm1, %v172_v5  ;;  %364 = vmatmul.msk.f32.gmra.mxu3 %vm177_vm1, %v172_v5 }
  0x70   : > { %v268_v26 = vpop.permute.xlu2 %267 }
  0xa0   : > { %v209_v17 = vpop.f32.mrf.mxu0  ;;  %v235_v19 = vpop.f32.mrf.mxu1 }
  0xa4   : > { %v212_v8 = vpop.f32.mrf.mxu2  ;;  %v238_v9 = vpop.f32.mrf.mxu3 }
  0xa5   : > { %244 = vrot.lane.b32.xlu0 %v212_v8, %s483_s10 }
  0xac   : > { %v215_v10 = vpop.f32.mrf.mxu2  ;;  %v241_v11 = vpop.f32.mrf.mxu3 }
  0xad   : > { %246 = vrot.lane.b32.xlu0 %v238_v9, %s483_s10  ;;  %255 = vrot.lane.b32.xlu1 %v215_v10, %s484_s11 }
  0xb5   : > { %257 = vrot.lane.b32.xlu1 %v241_v11, %s484_s11 }
 0x117   : > { %v245_v12 = vpop.permute.xlu0 %244 }
 0x11f   : > { %v256_v15 = vpop.permute.xlu1 %255  ;;  %v247_v16 = vpop.permute.xlu0 %246 }
 0x120   : > { %v251_v18 = vsel %vm250_vm2, %v245_v12, %v247_v16  ;;  %v252_v20 = vsel %vm250_vm2, %v247_v16, %v245_v12 }
 0x121   : > { %v253_v21 = vadd.f32 %v251_v18, %v209_v17  ;;  %v254_v22 = vadd.f32 %v252_v20, %v235_v19 }
 0x127   : > { %v258_v23 = vpop.permute.xlu1 %257 }
 0x128   : > { %v260_v24 = vsel %vm259_vm3, %v256_v15, %v258_v23  ;;  %v261_v25 = vsel %vm259_vm3, %v258_v23, %v256_v15 }
 0x129   : > { %v262_v27 = vadd.f32 %v260_v24, %v253_v21  ;;  %v263_v28 = vadd.f32 %v261_v25, %v254_v22 }
 0x12b   : > { %v270_v29 = vadd.f32 %v268_v26, %v262_v27  ;;  %v271_v30 = vadd.f32 %v268_v26, %v263_v28 }
 0x12d   : > { %272 = vst [vmem:[%s163_s27] sm:$0xff] %v270_v29 }
 0x12e   : > { %273 = vst [vmem:[%s163_s27 + $0x8] sm:$0xff] %v271_v30 }
 0x12f   : > { %445 = shalt.err (!%p442_p3)
}
 0x130   : > { %374 = dma.vmem_to_hbm [thread:$0]  (%p543_p5), %s289_s16, 256, %s291_s28, %s275_s29  }
 0x131 PF: > { %p380_p4 = scmp.ge.s32.totalorder %s480_s15, 2  ;;  %s302_s10 = sand.u32 1, %s468_s12  }
 0x132   : > { %s303_s11 = scalar_lea.sflag [#allocation3], %s302_s10 }
 0x133   : > { %p377_p7 = pnand %p380_p4, %p547_p6 }
 0x135   : > { %p378_p8 = pneg %p377_p7 }
 0x137   : > { %463 = dma.done.wait (%p378_p8), %s303_s11, 256  }
 0x138   : > { %465 = vsyncadd (%p378_p8), %s303_s11, 4294967040  ;;  %p13_p9 = scmp.ge.s32.totalorder %s530_s18, 4   ;;  %s608_s12 = smov %s472_s13 }
 0x139   : > { %s609_s13 = smov %s476_s14  ;;  %s610_s14 = smov %s541_s21 }
 0x13a   : > { %s611_s15 = smov %s530_s18  ;;  %15 = sbr.rel (!%p13_p9) target bundleno = 3 (0x3), region = 67 }
 0x13f   :  { %309 = vsyncpa [#allocation3], 1 }
 0x140   :  { %311 = vsyncpa [#allocation3 + $0x1], 1 }

</bundles_post_ra>
